<compile_context>
chip_gen: v6e
topology: v6e:2x2x1
jax: 0.10.0
libtpu: 0.0.40
codegen_flags: <defaults>
</compile_context>

<pallas_src>
import math
import functools

import jax
import jax.numpy as jnp
from jax.experimental import pallas as pl
from jax.experimental.pallas import tpu as pltpu

LANE = 128


def _round_up(x, n):
    return ((x + n - 1) // n) * n


def _mlp_kernel(num_layers, seg_widths, bias_offsets, *refs):
    """Fused MLP on one (TM, K_pad) row tile: [Linear -> ReLU]*(L-1) -> Linear.

    refs = (x_ref, w_0, ..., w_{L-1}, bias_packed_ref, o_ref)
    All feature dims are 128-padded, so every load/store is lane-dense and the
    bias slice uses the full 128-aligned segment width. Matmuls run in the
    operand dtype on the MXU with f32 accumulation; bias add / ReLU in f32.
    """
    x_ref = refs[0]
    w_refs = refs[1:1 + num_layers]
    b_ref = refs[1 + num_layers]
    o_ref = refs[2 + num_layers]

    h = x_ref[...]
    for i in range(num_layers):
        w = w_refs[i][...]
        off = bias_offsets[i]                       # static, 128-aligned offset
        seg = seg_widths[i]                         # static, 128-aligned width
        b = b_ref[:, off:off + seg].astype(jnp.float32)          # (1, seg)
        acc = jnp.dot(h, w, preferred_element_type=jnp.float32) + b
        if i < num_layers - 1:
            acc = jnp.maximum(acc, 0.0)                           # ReLU
            h = acc.astype(w_refs[i + 1].dtype)                   # stay on MXU fast path
        else:
            h = acc
    o_ref[...] = h.astype(o_ref.dtype)


def mlp_pallas(x, weights, biases, *, tm=None, matmul_in_bf16=False,
               lane_align=LANE):
    """x: (..., input_dim); weights[i]: (in_i, out_i); biases[i]: (out_i,).

    lane_align: feature-dim alignment (128 default; 256 can help v6e/v7x when
    dims are already >=128 multiples of 256).
    matmul_in_bf16: cast f32 x/W to bf16 for the matmul (f32 accumulation kept).
    """
    num_layers = len(weights)
    *lead, in_dim = x.shape
    m = math.prod(lead) if lead else 1
    out_dim = int(weights[-1].shape[1])
    out_dtype = x.dtype

    # ---- matmul operand dtype (optional bf16 fast path for f32 inputs) ----
    if matmul_in_bf16 and jnp.dtype(x.dtype) == jnp.dtype(jnp.float32):
        mm_dtype = jnp.bfloat16
    else:
        mm_dtype = x.dtype
    mm_itemsize = jnp.dtype(mm_dtype).itemsize
    out_itemsize = jnp.dtype(out_dtype).itemsize
    sublane = 8 if mm_itemsize >= 4 else 16

    # ---- pad ALL feature dims to lane-dense multiples of 128 ----
    k_pad = _round_up(in_dim, lane_align)
    w_list, b_list, seg_widths = [], [], []
    for w, b in zip(weights, biases):
        ki, ni = int(w.shape[0]), int(w.shape[1])
        kp, npad = _round_up(ki, lane_align), _round_up(ni, lane_align)
        wp = w if (kp == ki and npad == ni) else jnp.pad(
            w, ((0, kp - ki), (0, npad - ni)))
        bp = b if npad == ni else jnp.pad(b, ((0, npad - ni),))
        w_list.append(wp.astype(mm_dtype))
        b_list.append(bp.astype(jnp.float32))
        seg_widths.append(npad)
    out_pad = seg_widths[-1]
    seg_widths = tuple(seg_widths)

    # ---- pack all (already 128-aligned) biases into one (1, sum) f32 array ----
    bias_offsets, off = [], 0
    for seg in seg_widths:
        bias_offsets.append(off)
        off += seg
    bias_offsets = tuple(bias_offsets)
    bias_packed = jnp.concatenate(b_list).reshape(1, -1)

    # ---- flatten rows, cast, pad columns ----
    x2 = x.reshape(m, in_dim).astype(mm_dtype)
    if k_pad != in_dim:
        x2 = jnp.pad(x2, ((0, 0), (0, k_pad - in_dim)))

    # ---- row tiling: large default tile; per-step overhead ~0.35us ----
    if tm is None:
        tm = 512 if mm_itemsize >= 4 else 1024
    tm = max(sublane, _round_up(min(tm, _round_up(m, sublane)), sublane))
    # guarantee >= 2 grid steps when M allows so "parallel" M lands on both
    # v7x TensorCores (negligible cost on single-TC v5e/v6e)
    while _round_up(m, tm) // tm < 2 and tm > sublane:
        tm = _round_up(tm // 2, sublane)
    m_pad = _round_up(m, tm)
    if m_pad != m:
        x2 = jnp.pad(x2, ((0, m_pad - m), (0, 0)))
    grid = (m_pad // tm,)

    # ---- cost estimate + generation-aware VMEM budget ----
    weight_bytes = sum(int(w.size) * w.dtype.itemsize for w in w_list)
    bias_bytes = int(bias_packed.size) * bias_packed.dtype.itemsize
    flops = 2 * m_pad * sum(int(w.shape[0]) * int(w.shape[1]) for w in w_list)
    bytes_accessed = (int(x2.size) * x2.dtype.itemsize + weight_bytes
                      + bias_bytes + m_pad * out_pad * out_itemsize)
    cost = pl.CostEstimate(flops=int(flops), transcendentals=0,
                           bytes_accessed=int(bytes_accessed))

    max_width = max([k_pad] + list(seg_widths))
    vmem_bytes = (
        2 * tm * k_pad * mm_itemsize          # double-buffered x tiles
        + 2 * tm * out_pad * out_itemsize     # double-buffered out tiles
        + 2 * weight_bytes + 2 * bias_bytes   # pessimistic (covers non-Buffered(1) fallback)
        + 2 * tm * max_width * 4              # f32 intermediates headroom
    )
    try:
        vmem_cap = int(pltpu.get_tpu_info().vmem_capacity_bytes)
    except Exception:
        vmem_cap = 128 << 20                  # v5e/v6e physical VMEM
    vmem_ceiling = max(vmem_cap - (16 << 20), 32 << 20)   # ~48 MiB cap on v7x
    vmem_limit = int(min(max(int(vmem_bytes * 1.25) + (4 << 20), 32 << 20),
                         vmem_ceiling))

    args = [x2] + w_list + [bias_packed]
    kernel = functools.partial(_mlp_kernel, num_layers, seg_widths, bias_offsets)

    def _call(resident_mode):
        # x tile streams along M; weights/biases VMEM-resident (constant index).
        in_specs = [pl.BlockSpec((tm, k_pad), lambda i: (i, 0))]
        for w in w_list:
            if resident_mode is None:
                in_specs.append(pl.BlockSpec(w.shape, lambda i: (0, 0)))
            else:
                in_specs.append(pl.BlockSpec(w.shape, lambda i: (0, 0),
                                             pipeline_mode=resident_mode))
        if resident_mode is None:
            in_specs.append(pl.BlockSpec(bias_packed.shape, lambda i: (0, 0)))
        else:
            in_specs.append(pl.BlockSpec(bias_packed.shape, lambda i: (0, 0),
                                         pipeline_mode=resident_mode))
        out_specs = pl.BlockSpec((tm, out_pad), lambda i: (i, 0))
        return pl.pallas_call(
            kernel,
            grid=grid,
            in_specs=in_specs,
            out_specs=out_specs,
            out_shape=jax.ShapeDtypeStruct((m_pad, out_pad), out_dtype),
            compiler_params=pltpu.CompilerParams(
                dimension_semantics=("parallel",),
                vmem_limit_bytes=vmem_limit),
            cost_estimate=cost,
        )(*args)

    if hasattr(pl, "Buffered"):
        try:
            out = _call(pl.Buffered(1))     # don't double-buffer resident weights
        except Exception:
            out = _call(None)               # fall back to default buffering
    else:
        out = _call(None)

    out = out[:m, :out_dim]
    return out.reshape(*lead, out_dim)


def init_mlp_params(key, input_dim, hidden_dim, output_dim, num_layers,
                    dtype=jnp.float32):
    """Deterministic init matching nn.Linear default (uniform +/- 1/sqrt(fan_in)).

    Weights are stored already transposed to (in, out) for the kernel.
    """
    h = [hidden_dim] * (num_layers - 1)
    dims_in = [input_dim] + h
    dims_out = h + [output_dim]
    weights, biases = [], []
    for n_in, n_out in zip(dims_in, dims_out):
        key, kw, kb = jax.random.split(key, 3)
        bound = 1.0 / math.sqrt(n_in)
        weights.append(jax.random.uniform(kw, (n_in, n_out), dtype, -bound, bound))
        biases.append(jax.random.uniform(kb, (n_out,), dtype, -bound, bound))
    return weights, biases


def mlp_reference(x, weights, biases):
    h = x
    for i, (w, b) in enumerate(zip(weights, biases)):
        h = h @ w + b
        if i < len(weights) - 1:
            h = jax.nn.relu(h)
    return h


if __name__ == "__main__":
    # Small shapes consistent with DAB-DETR's bbox-head MLP usage:
    # x is (num_queries, batch, d_model); MLP(d_model, hidden, 4, 3).
    seq, batch = 8, 2
    input_dim, hidden_dim, output_dim, num_layers = 32, 64, 4, 3

    key = jax.random.PRNGKey(0)
    key, kx = jax.random.split(key)
    x = jax.random.normal(kx, (seq, batch, input_dim), dtype=jnp.float32)

    weights, biases = init_mlp_params(
        key, input_dim, hidden_dim, output_dim, num_layers)

    # 1) small-M path (auto tile, >=2 grid steps)
    out = mlp_pallas(x, weights, biases)
    out = jax.block_until_ready(out)
    ref = mlp_reference(x, weights, biases)
    assert out.shape == (seq, batch, output_dim)
    assert jnp.allclose(out, ref, atol=1e-4, rtol=1e-4), "mismatch vs reference"

    # 2) larger-M path (multiple tiles, padded tail rows)
    key, kx2 = jax.random.split(key)
    x_big = jax.random.normal(kx2, (300, batch, input_dim), dtype=jnp.float32)
    out_big = jax.block_until_ready(mlp_pallas(x_big, weights, biases))
    ref_big = mlp_reference(x_big, weights, biases)
    assert out_big.shape == (300, batch, output_dim)
    assert jnp.allclose(out_big, ref_big, atol=1e-4, rtol=1e-4), "mismatch (tiled)"

    # 3) bf16-matmul fast path (f32 accumulation), loose tolerance
    out_bf = jax.block_until_ready(
        mlp_pallas(x_big, weights, biases, matmul_in_bf16=True))
    assert out_bf.shape == (300, batch, output_dim)
    assert jnp.allclose(out_bf, ref_big, atol=0.15, rtol=0.05), "mismatch (bf16)"

    print("KERNEL_OK")
</pallas_src>

<mosaic_0001>
module attributes {stable_mosaic.version = 11 : i64} {
  func.func @_mlp_kernel(%arg0: i32, %arg1: memref<8x128xf32, #tpu.memory_space<vmem>>, %arg2: memref<128x128xf32, #tpu.memory_space<vmem>>, %arg3: memref<128x128xf32, #tpu.memory_space<vmem>>, %arg4: memref<128x128xf32, #tpu.memory_space<vmem>>, %arg5: memref<1x384xf32, #tpu.memory_space<vmem>>, %arg6: memref<8x128xf32, #tpu.memory_space<vmem>>) attributes {dimension_semantics = [#tpu.dimension_semantics<parallel>], iteration_bounds = array<i64: 2>, scalar_prefetch = 0 : i64, scratch_operands = 0 : i64, tpu.core_type = #tpu.core_type<tc>, window_params = [{transform_indices = @transform_0, window_bounds = array<i64: 8, 128>}, {pipeline_mode = #tpu.pipeline_mode<synchronous>, transform_indices = @transform_1, window_bounds = array<i64: 128, 128>}, {pipeline_mode = #tpu.pipeline_mode<synchronous>, transform_indices = @transform_2, window_bounds = array<i64: 128, 128>}, {pipeline_mode = #tpu.pipeline_mode<synchronous>, transform_indices = @transform_3, window_bounds = array<i64: 128, 128>}, {pipeline_mode = #tpu.pipeline_mode<synchronous>, transform_indices = @transform_4, window_bounds = array<i64: 1, 384>}, {transform_indices = @transform_5, window_bounds = array<i64: 8, 128>}]} {
    %c0 = arith.constant 0 : index
    %c0_0 = arith.constant 0 : index
    %0 = vector.load %arg1[%c0, %c0_0] : memref<8x128xf32, #tpu.memory_space<vmem>>, vector<8x128xf32>
    %c0_1 = arith.constant 0 : index
    %c0_2 = arith.constant 0 : index
    %1 = vector.load %arg2[%c0_1, %c0_2] : memref<128x128xf32, #tpu.memory_space<vmem>>, vector<128x128xf32>
    %c0_3 = arith.constant 0 : index
    %c0_4 = arith.constant 0 : index
    %2 = vector.load %arg5[%c0_3, %c0_4] : memref<1x384xf32, #tpu.memory_space<vmem>>, vector<1x128xf32>
    %cst = arith.constant dense<0.000000e+00> : vector<8x128xf32>
    %3 = tpu.matmul %0, %1, %cst {dimension_numbers = #tpu.dot_dimension_numbers<[1], [0], [0], [1], [0, 0, 1, 1], [], []>} : vector<8x128xf32>, vector<128x128xf32>, vector<8x128xf32> -> vector<8x128xf32>
    %4 = vector.broadcast %2 : vector<1x128xf32> to vector<8x128xf32>
    %5 = arith.addf %3, %4 : vector<8x128xf32>
    %cst_5 = arith.constant 0.000000e+00 : f32
    %6 = vector.broadcast %cst_5 : f32 to vector<8x128xf32>
    %7 = arith.maximumf %5, %6 : vector<8x128xf32>
    %c0_6 = arith.constant 0 : index
    %c0_7 = arith.constant 0 : index
    %8 = vector.load %arg3[%c0_6, %c0_7] : memref<128x128xf32, #tpu.memory_space<vmem>>, vector<128x128xf32>
    %c0_8 = arith.constant 0 : index
    %c128 = arith.constant 128 : index
    %9 = vector.load %arg5[%c0_8, %c128] : memref<1x384xf32, #tpu.memory_space<vmem>>, vector<1x128xf32>
    %cst_9 = arith.constant dense<0.000000e+00> : vector<8x128xf32>
    %10 = tpu.matmul %7, %8, %cst_9 {dimension_numbers = #tpu.dot_dimension_numbers<[1], [0], [0], [1], [0, 0, 1, 1], [], []>} : vector<8x128xf32>, vector<128x128xf32>, vector<8x128xf32> -> vector<8x128xf32>
    %11 = vector.broadcast %9 : vector<1x128xf32> to vector<8x128xf32>
    %12 = arith.addf %10, %11 : vector<8x128xf32>
    %cst_10 = arith.constant 0.000000e+00 : f32
    %13 = vector.broadcast %cst_10 : f32 to vector<8x128xf32>
    %14 = arith.maximumf %12, %13 : vector<8x128xf32>
    %c0_11 = arith.constant 0 : index
    %c0_12 = arith.constant 0 : index
    %15 = vector.load %arg4[%c0_11, %c0_12] : memref<128x128xf32, #tpu.memory_space<vmem>>, vector<128x128xf32>
    %c0_13 = arith.constant 0 : index
    %c256 = arith.constant 256 : index
    %16 = vector.load %arg5[%c0_13, %c256] : memref<1x384xf32, #tpu.memory_space<vmem>>, vector<1x128xf32>
    %cst_14 = arith.constant dense<0.000000e+00> : vector<8x128xf32>
    %17 = tpu.matmul %14, %15, %cst_14 {dimension_numbers = #tpu.dot_dimension_numbers<[1], [0], [0], [1], [0, 0, 1, 1], [], []>} : vector<8x128xf32>, vector<128x128xf32>, vector<8x128xf32> -> vector<8x128xf32>
    %18 = vector.broadcast %16 : vector<1x128xf32> to vector<8x128xf32>
    %19 = arith.addf %17, %18 : vector<8x128xf32>
    %c0_15 = arith.constant 0 : index
    %c0_16 = arith.constant 0 : index
    %20 = vector.load %arg6[%c0_15, %c0_16] : memref<8x128xf32, #tpu.memory_space<vmem>>, vector<8x128xf32>
    tpu.vector_store %arg6[%c0_15, %c0_16], %19 {strides = array<i32>} : memref<8x128xf32, #tpu.memory_space<vmem>>, vector<8x128xf32>,
    return
  }
  func.func @transform_0(%arg0: i32) -> (i32, i32) {
    %c0_i32 = arith.constant 0 : i32
    %c0_i32_0 = arith.constant 0 : i32
    return %arg0, %c0_i32 : i32, i32
  }
  func.func @transform_1(%arg0: i32) -> (i32, i32) {
    %c0_i32 = arith.constant 0 : i32
    %c0_i32_0 = arith.constant 0 : i32
    %c0_i32_1 = arith.constant 0 : i32
    return %c0_i32, %c0_i32_0 : i32, i32
  }
  func.func @transform_2(%arg0: i32) -> (i32, i32) {
    %c0_i32 = arith.constant 0 : i32
    %c0_i32_0 = arith.constant 0 : i32
    %c0_i32_1 = arith.constant 0 : i32
    return %c0_i32, %c0_i32_0 : i32, i32
  }
  func.func @transform_3(%arg0: i32) -> (i32, i32) {
    %c0_i32 = arith.constant 0 : i32
    %c0_i32_0 = arith.constant 0 : i32
    %c0_i32_1 = arith.constant 0 : i32
    return %c0_i32, %c0_i32_0 : i32, i32
  }
  func.func @transform_4(%arg0: i32) -> (i32, i32) {
    %c0_i32 = arith.constant 0 : i32
    %c0_i32_0 = arith.constant 0 : i32
    %c0_i32_1 = arith.constant 0 : i32
    return %c0_i32, %c0_i32_0 : i32, i32
  }
  func.func @transform_5(%arg0: i32) -> (i32, i32) {
    %c0_i32 = arith.constant 0 : i32
    %c0_i32_0 = arith.constant 0 : i32
    return %arg0, %c0_i32 : i32, i32
  }
}

module attributes {stable_mosaic.version = 11 : i64} {
  func.func @_mlp_kernel(%arg0: i32, %arg1: memref<8x128xf32, #tpu.memory_space<vmem>>, %arg2: memref<128x128xf32, #tpu.memory_space<vmem>>, %arg3: memref<128x128xf32, #tpu.memory_space<vmem>>, %arg4: memref<128x128xf32, #tpu.memory_space<vmem>>, %arg5: memref<1x384xf32, #tpu.memory_space<vmem>>, %arg6: memref<8x128xf32, #tpu.memory_space<vmem>>) attributes {dimension_semantics = [#tpu.dimension_semantics<parallel>], iteration_bounds = array<i64: 2>, scalar_prefetch = 0 : i64, scratch_operands = 0 : i64, tpu.core_type = #tpu.core_type<tc>, window_params = [{transform_indices = @transform_0, window_bounds = array<i64: 8, 128>}, {pipeline_mode = #tpu.pipeline_mode<synchronous>, transform_indices = @transform_1, window_bounds = array<i64: 128, 128>}, {pipeline_mode = #tpu.pipeline_mode<synchronous>, transform_indices = @transform_2, window_bounds = array<i64: 128, 128>}, {pipeline_mode = #tpu.pipeline_mode<synchronous>, transform_indices = @transform_3, window_bounds = array<i64: 128, 128>}, {pipeline_mode = #tpu.pipeline_mode<synchronous>, transform_indices = @transform_4, window_bounds = array<i64: 1, 384>}, {transform_indices = @transform_5, window_bounds = array<i64: 8, 128>}]} {
    %c0 = arith.constant 0 : index
    %c0_0 = arith.constant 0 : index
    %0 = vector.load %arg1[%c0, %c0_0] : memref<8x128xf32, #tpu.memory_space<vmem>>, vector<8x128xf32>
    %c0_1 = arith.constant 0 : index
    %c0_2 = arith.constant 0 : index
    %1 = vector.load %arg2[%c0_1, %c0_2] : memref<128x128xf32, #tpu.memory_space<vmem>>, vector<128x128xf32>
    %c0_3 = arith.constant 0 : index
    %c0_4 = arith.constant 0 : index
    %2 = vector.load %arg5[%c0_3, %c0_4] : memref<1x384xf32, #tpu.memory_space<vmem>>, vector<1x128xf32>
    %cst = arith.constant dense<0.000000e+00> : vector<8x128xf32>
    %3 = tpu.matmul %0, %1, %cst {dimension_numbers = #tpu.dot_dimension_numbers<[1], [0], [0], [1], [0, 0, 1, 1], [], []>} : vector<8x128xf32>, vector<128x128xf32>, vector<8x128xf32> -> vector<8x128xf32>
    %4 = vector.broadcast %2 : vector<1x128xf32> to vector<8x128xf32>
    %5 = arith.addf %3, %4 : vector<8x128xf32>
    %cst_5 = arith.constant 0.000000e+00 : f32
    %6 = vector.broadcast %cst_5 : f32 to vector<8x128xf32>
    %7 = arith.maximumf %5, %6 : vector<8x128xf32>
    %c0_6 = arith.constant 0 : index
    %c0_7 = arith.constant 0 : index
    %8 = vector.load %arg3[%c0_6, %c0_7] : memref<128x128xf32, #tpu.memory_space<vmem>>, vector<128x128xf32>
    %c0_8 = arith.constant 0 : index
    %c128 = arith.constant 128 : index
    %9 = vector.load %arg5[%c0_8, %c128] : memref<1x384xf32, #tpu.memory_space<vmem>>, vector<1x128xf32>
    %cst_9 = arith.constant dense<0.000000e+00> : vector<8x128xf32>
    %10 = tpu.matmul %7, %8, %cst_9 {dimension_numbers = #tpu.dot_dimension_numbers<[1], [0], [0], [1], [0, 0, 1, 1], [], []>} : vector<8x128xf32>, vector<128x128xf32>, vector<8x128xf32> -> vector<8x128xf32>
    %11 = vector.broadcast %9 : vector<1x128xf32> to vector<8x128xf32>
    %12 = arith.addf %10, %11 : vector<8x128xf32>
    %cst_10 = arith.constant 0.000000e+00 : f32
    %13 = vector.broadcast %cst_10 : f32 to vector<8x128xf32>
    %14 = arith.maximumf %12, %13 : vector<8x128xf32>
    %c0_11 = arith.constant 0 : index
    %c0_12 = arith.constant 0 : index
    %15 = vector.load %arg4[%c0_11, %c0_12] : memref<128x128xf32, #tpu.memory_space<vmem>>, vector<128x128xf32>
    %c0_13 = arith.constant 0 : index
    %c256 = arith.constant 256 : index
    %16 = vector.load %arg5[%c0_13, %c256] : memref<1x384xf32, #tpu.memory_space<vmem>>, vector<1x128xf32>
    %cst_14 = arith.constant dense<0.000000e+00> : vector<8x128xf32>
    %17 = tpu.matmul %14, %15, %cst_14 {dimension_numbers = #tpu.dot_dimension_numbers<[1], [0], [0], [1], [0, 0, 1, 1], [], []>} : vector<8x128xf32>, vector<128x128xf32>, vector<8x128xf32> -> vector<8x128xf32>
    %18 = vector.broadcast %16 : vector<1x128xf32> to vector<8x128xf32>
    %19 = arith.addf %17, %18 : vector<8x128xf32>
    %c0_15 = arith.constant 0 : index
    %c0_16 = arith.constant 0 : index
    %20 = vector.load %arg6[%c0_15, %c0_16] : memref<8x128xf32, #tpu.memory_space<vmem>>, vector<8x128xf32>
    tpu.vector_store %arg6[%c0_15, %c0_16], %19 {strides = array<i32>} : memref<8x128xf32, #tpu.memory_space<vmem>>, vector<8x128xf32>,
    return
  }
  func.func @transform_0(%arg0: i32) -> (i32, i32) {
    %c0_i32 = arith.constant 0 : i32
    %c0_i32_0 = arith.constant 0 : i32
    return %arg0, %c0_i32 : i32, i32
  }
  func.func @transform_1(%arg0: i32) -> (i32, i32) {
    %c0_i32 = arith.constant 0 : i32
    %c0_i32_0 = arith.constant 0 : i32
    %c0_i32_1 = arith.constant 0 : i32
    return %c0_i32, %c0_i32_0 : i32, i32
  }
  func.func @transform_2(%arg0: i32) -> (i32, i32) {
    %c0_i32 = arith.constant 0 : i32
    %c0_i32_0 = arith.constant 0 : i32
    %c0_i32_1 = arith.constant 0 : i32
    return %c0_i32, %c0_i32_0 : i32, i32
  }
  func.func @transform_3(%arg0: i32) -> (i32, i32) {
    %c0_i32 = arith.constant 0 : i32
    %c0_i32_0 = arith.constant 0 : i32
    %c0_i32_1 = arith.constant 0 : i32
    return %c0_i32, %c0_i32_0 : i32, i32
  }
  func.func @transform_4(%arg0: i32) -> (i32, i32) {
    %c0_i32 = arith.constant 0 : i32
    %c0_i32_0 = arith.constant 0 : i32
    %c0_i32_1 = arith.constant 0 : i32
    return %c0_i32, %c0_i32_0 : i32, i32
  }
  func.func @transform_5(%arg0: i32) -> (i32, i32) {
    %c0_i32 = arith.constant 0 : i32
    %c0_i32_0 = arith.constant 0 : i32
    return %arg0, %c0_i32 : i32, i32
  }
}

</mosaic_0001>

<bundles_post_ra>
// kernel: tpu_custom_call.1
= control target key start
LH: loop header
LB: loop body
LE: loop exit
PB: predicated region body
PF: predicated region fallthrough
CT: control target
= control target key end

     0   :  { %10 = vsyncpa [#allocation3], 0  ;;  %s1410_s0 = inlined_call_operand.hbm [shape: f32[16,128], index: 0, kind: input, shape index: {}]   ;;  %s1411_s1 = inlined_call_operand.hbm [shape: f32[128,128], index: 1, kind: input, shape index: {}]   ;;  %s1412_s2 = inlined_call_operand.hbm [shape: f32[128,128], index: 2, kind: input, shape index: {}]   ;;  %s1413_s3 = inlined_call_operand.hbm [shape: f32[128,128], index: 3, kind: input, shape index: {}]   ;;  %s1414_s4 = inlined_call_operand.vmem [shape: f32[1,384], index: 4, kind: input, shape index: {}]   ;;  %s1415_s5 = inlined_call_operand.hbm [shape: f32[16,128], index: 5, kind: output, shape index: {}]  }
   0x1   :  { %12 = vsyncpa [#allocation3 + $0x1], 0 }
   0x2   :  { %13 = vsyncpa [#allocation6], 0 }
   0x3   :  { %14 = vsyncpa [#allocation9], 0 }
   0x4   :  { %15 = vsyncpa [#allocation4], 0 }
   0x5   :  { %17 = vsyncpa [#allocation4 + $0x1], 0  ;;  %s1157_s18 = smov 0   ;;  %s1159_s19 = smov 0  }
   0x6   :  { %s1161_s20 = smov 0   ;;  %s1163_s21 = smov 0  }
   0x7 LB: > { %s1178_s22 = sadd.s32 4294967295, %s1116_s21   ;;  %s680_s23 = sadd.s32 4294967294, %s1116_s21   ;;  %s1116_s21 = sphi %s1163_s21, %s1439_s21   ;;  %s1112_s20 = sphi %s1161_s20, %s1438_s20   ;;  %s1108_s19 = sphi %s1159_s19, %s1437_s19   ;;  %s1104_s18 = sphi %s1157_s18, %s1436_s18  }
   0x8   : > { %p43_p0 = scmp.ne.s32.totalorder %s1108_s19, %s1104_s18  ;;  %p1416_p1 = scmp.eq.s32.totalorder %s1178_s22, 0 }
   0x9   : > { %p157_p3 = scmp.eq.s32.totalorder %s680_s23, 1  ;;  %p681_p5 = scmp.ge.s32.totalorder %s1116_s21, 1 }
   0xa   : > { %p1187_p4 = por %p1416_p1, %p43_p0  ;;  %p164_p7 = scmp.lt.s32.totalorder %s1116_s21, 3 }
   0xb   : > { %p1192_p6 = por %p157_p3, %p43_p0  ;;  %s1118_s27 = smov [#allocation5]  }
   0xc   : > { %s1420_s24 = scalar_select %p1187_p4, 1, 0 }
   0xd   : > { %s1421_s25 = scalar_select %p1192_p6, 1, 0 }
   0xe   : > { %p1197_p8 = pnand %p681_p5, %p164_p7  ;;  %s176_s28 = sshll.u32 %s1118_s27, 4  ;;  %s177_s28 = int_to_ptr.vmem [resolvable:$true] %s176_s28 }
   0xf   : > { %s1119_s30 = smov [#allocation7]   ;;  %s1120_s7 = smov [#allocation8]  }
  0x10   : > { %s1422_s26 = scalar_select %p1197_p8, 1, 0 }
  0x11   : > { %p873_p9 = pneg %p1197_p8  ;;  %s189_s6 = sshll.u32 %s1119_s30, 4  ;;  %s190_s6 = int_to_ptr.vmem [resolvable:$true] %s189_s6 }
  0x12   : > { %s202_s8 = sshll.u32 %s1120_s7, 4  ;;  %s949_s9 = scalar_lea.vmem %s177_s28, 2048  ;;  %s203_s8 = int_to_ptr.vmem [resolvable:$true] %s202_s8 }
  0x13   : > { %p1206_p11 = pnand %p873_p9, %p1416_p1  ;;  %p950_p13 = scmp.ne.s32.totalorder %s177_s28, %s949_s9 }
  0x14   : > { %p957_p5 = scmp.lt.s32.totalorder %s177_s28, %s177_s28  ;;  %p958_p7 = scmp.lt.s32.totalorder %s949_s9, %s949_s9 }
  0x15   : > { %p940_p12 = pneg %p1206_p11 }
  0x16   : > { %p959_p9 = por %p958_p7, %p957_p5 }
  0x17   : > { %p952_p0 = pnand %p950_p13, %p940_p12 }
  0x19   : > { %p953_p3 = pneg %p952_p0 }
  0x1b   : > { %p960_p10 = pnand %p959_p9, %p953_p3 }
  0x1d   : > { %963 = shalt.err (!%p960_p10)
}
  0x1e   : > { %s1121_s10 = smov 128   ;;  %s1122_s11 = smov 8  }
  0x1f   : > { %876 = dma.hbm_to_vmem [thread:$0]  (!%p1206_p11), %s1411_s1, 2048, %s177_s28, [#allocation6], %s1121_s10, %s1121_s10, %s1122_s11  }
  0x20   : > { %s975_s14 = scalar_lea.vmem %s190_s6, 2048  ;;  %p983_p2 = scmp.lt.s32.totalorder %s190_s6, %s190_s6 }
  0x21   : > { %p976_p1 = scmp.ne.s32.totalorder %s190_s6, %s975_s14  ;;  %p984_p6 = scmp.lt.s32.totalorder %s975_s14, %s975_s14 }
  0x23   : > { %p978_p13 = pnand %p976_p1, %p940_p12  ;;  %p985_p5 = por %p984_p6, %p983_p2 }
  0x25   : > { %p979_p0 = pneg %p978_p13 }
  0x27   : > { %p986_p3 = pnand %p985_p5, %p979_p0 }
  0x29   : > { %989 = shalt.err (!%p986_p3)
}
  0x2a   : > { %879 = dma.hbm_to_vmem [thread:$0]  (!%p1206_p11), %s1412_s2, 2048, %s190_s6, [#allocation6], %s1121_s10, %s1121_s10, %s1122_s11  }
  0x2b   : > { %s1001_s17 = scalar_lea.vmem %s203_s8, 2048  ;;  %p1009_p9 = scmp.lt.s32.totalorder %s203_s8, %s203_s8 }
  0x2c   : > { %p1002_p10 = scmp.ne.s32.totalorder %s203_s8, %s1001_s17  ;;  %p1010_p13 = scmp.lt.s32.totalorder %s1001_s17, %s1001_s17 }
  0x2e   : > { %p1004_p7 = pnand %p1002_p10, %p940_p12  ;;  %p1011_p4 = por %p1010_p13, %p1009_p9 }
  0x30   : > { %p1005_p1 = pneg %p1004_p7 }
  0x32   : > { %p1012_p2 = pnand %p1011_p4, %p1005_p1 }
  0x34   : > { %1015 = shalt.err (!%p1012_p2)
}
  0x35   : > { %882 = dma.hbm_to_vmem [thread:$0]  (!%p1206_p11), %s1413_s3, 2048, %s203_s8, [#allocation9], %s1121_s10, %s1121_s10, %s1122_s11  }
  0x36   : > { %s1237_s28 = sadd.s32 1, %s1116_s21   ;;  %s30_s29 = sadd.s32 1, %s1112_s20 }
  0x37   : > { %s27_s30 = ssub.s32 %s1116_s21, %s1237_s28  ;;  %p37_p6 = scmp.ne.s32.totalorder %s1112_s20, %s1108_s19 }
  0x38   : > { %p28_p4 = scmp.eq.s32.totalorder %s27_s30, 0  ;;  %p38_p12 = scmp.eq.s32.totalorder %s1116_s21, 0 }
  0x39   : > { %p894_p0 = scmp.lt.s32.totalorder %s1116_s21, 2  ;;  %p1424_p3 = scmp.eq.s32.totalorder %s1178_s22, 1 }
  0x3a   : > { %s1247_s6 = scalar_select %p28_p4, %s1112_s20, %s30_s29  }
  0x3b   : > { %p39_p5 = por %p38_p12, %p37_p6  ;;  %p1251_p10 = por %p1424_p3, %p37_p6 }
  0x3c   : > { %s219_s9 = sand.u32 1, %s1112_s20   ;;  %s687_s12 = sshll.u32 %s1116_s21, 7 }
  0x3d   : > { %s1425_s7 = scalar_select %p1251_p10, 1, 0 }
  0x3e   : > { %s686_s8 = sshll.u32 %s219_s9, 3  ;;  %s1260_s13 = scalar_lea.hbm %s1410_s0, %s687_s12 }
  0x3f   : > { %s223_s14 = scalar_lea.vmem [#allocation2], %s686_s8  ;;  %p1262_p11 = pnand %p894_p0, %p39_p5 }
  0x40   : > { %s230_s15 = sshll.u32 %s223_s14, 4  ;;  %s220_s17 = scalar_lea.sflag [#allocation3], %s219_s9  ;;  %s231_s15 = int_to_ptr.vmem [resolvable:$true] %s230_s15 }
  0x41   : > { %s1016_s23 = scalar_lea.hbm %s1260_s13, 128  ;;  %p1018_p1 = pneg %p1262_p11 }
  0x42   : > { %p1017_p7 = scmp.ne.s32.totalorder %s1260_s13, %s1016_s23  ;;  %s1021_s29 = scalar_lea.hbm %s1410_s0, 256 }
  0x43   : > { %p1022_p2 = scmp.lt.s32.totalorder %s1260_s13, %s1410_s0  ;;  %p1023_p4 = scmp.lt.s32.totalorder %s1021_s29, %s1016_s23 }
  0x44   : > { %p1019_p9 = pnand %p1018_p1, %p1017_p7 }
  0x45   : > { %p1024_p6 = por %p1023_p4, %p1022_p2 }
  0x46   : > { %p1020_p13 = pneg %p1019_p9 }
  0x48   : > { %p1025_p12 = pnand %p1024_p6, %p1020_p13 }
  0x4a   : > { %1028 = shalt.err (!%p1025_p12)
}
  0x4b   : > { %s1029_s10 = scalar_lea.vmem %s231_s15, 128  ;;  %s1123_s9 = smov [#allocation2]  }
  0x4c   : > { %p1030_p0 = scmp.ne.s32.totalorder %s231_s15, %s1029_s10  ;;  %s1034_s11 = sshll.u32 %s1123_s9, 4  ;;  %s1035_s11 = int_to_ptr.vmem [resolvable:$false] %s1034_s11 }
  0x4d   : > { %s1036_s14 = scalar_lea.vmem %s1035_s11, 256  ;;  %p1037_p7 = scmp.lt.s32.totalorder %s231_s15, %s1035_s11 }
  0x4e   : > { %p1032_p5 = pnand %p1030_p0, %p1018_p1  ;;  %p1038_p9 = scmp.lt.s32.totalorder %s1036_s14, %s1029_s10 }
  0x50   : > { %p1033_p3 = pneg %p1032_p5  ;;  %p1039_p10 = por %p1038_p9, %p1037_p7 }
  0x52   : > { %p1040_p8 = pnand %p1039_p10, %p1033_p3 }
  0x54   : > { %1043 = shalt.err (!%p1040_p8)
}
  0x55   : > { %886 = dma.hbm_to_vmem [thread:$0]  (!%p1262_p11), %s1260_s13, 128, %s231_s15, %s220_s17  }
  0x56   : > { %p1427_p13 = scmp.ne.s32.totalorder %s1422_s26, 0 }
  0x57   : > { %s1283_s23 = sand.u32 (!%p1427_p13), 1, %s1108_s19   ;;  %p1428_p8 = scmp.ne.s32.totalorder (!%p1427_p13), %s1420_s24, 0 }
  0x58   : > { %239 = sbr.rel (%p1427_p13) target bundleno = 736 (0x2e0), region = 40  ;;  %s689_s27 = sshll.u32 (!%p1427_p13), %s1283_s23, 3 }
  0x59   : > { %s242_s30 = scalar_lea.sflag (!%p1427_p13), [#allocation3], %s1283_s23  ;;  %s1289_s29 = scalar_lea.vmem (!%p1427_p13), [#allocation2], %s689_s27 }
  0x5d   : > { %1087 = dma.done.wait (%p1428_p8), %s242_s30, 128  }
  0x5e   : > { %1089 = vsyncadd (%p1428_p8), %s242_s30, 4294967168  ;;  %p1429_p10 = scmp.eq.s32.totalorder %s1178_s22, 0 }
  0x60   : > { %1091 = dma.done.wait (%p1429_p10), [#allocation6], 4096   ;;  %p1430_p11 = pmov %p1429_p10 }
  0x61   : > { %p1431_p1 = pmov %p1429_p10 }
  0x62   : > { %1093 = vsyncadd (%p1430_p11), [#allocation6], 4294963200 }
  0x63   : > { %1095 = dma.done.wait (%p1431_p1), [#allocation9], 2048   ;;  %p1432_p2 = pmov %p1431_p1 }
  0x64   : > { %v1124_v0 = vmov 0.0   ;;  %vm1125_vm0 = vmmov 0   ;;  %v300_v1 = vld [vmem:[#allocation5 + $0x78] sm:$0xff]  ;;  %v299_v2 = vld [vmem:[#allocation5 + $0x70] sm:$0xff]  ;;  %v298_v3 = vld [vmem:[#allocation5 + $0x68] sm:$0xff]  ;;  %s698_s12 = sshll.u32 %s1178_s22, 7 }
  0x65   : > { %1097 = vsyncadd (%p1432_p2), [#allocation9], 4294965248  ;;  %752 = vmatprep.subr.mxu0 %v1124_v0  ;;  %784 = vmatprep.mubr.msk.f32.mxu0 %vm1125_vm0, %v1124_v0  ;;  %v297_v4 = vld [vmem:[#allocation5 + $0x60] sm:$0xff]  ;;  %v394_v5 = vld [vmem:[#allocation7 + $0x78] sm:$0xff]  ;;  %s283_s8 = scalar_lea.vmem [#allocation10], %s689_s27  ;;  %s1373_s14 = scalar_lea.hbm %s1415_s5, %s698_s12 }
  0x66   : > { %787 = vmatprep.subr.mxu1 %v1124_v0  ;;  %819 = vmatprep.mubr.msk.f32.mxu1 %vm1125_vm0, %v1124_v0  ;;  %v296_v6 = vld [vmem:[#allocation5 + $0x58] sm:$0xff]  ;;  %v393_v7 = vld [vmem:[#allocation7 + $0x70] sm:$0xff]  ;;  %v392_v8 = vld [vmem:[#allocation7 + $0x68] sm:$0xff]  ;;  %s581_s10 = sshll.u32 %s283_s8, 4  ;;  %s568_s30 = scalar_lea.sflag [#allocation4], %s1283_s23  ;;  %s582_s10 = int_to_ptr.vmem [resolvable:$true] %s581_s10 }
  0x67   : > { %753 = vmatpush3.msra.mxu0 %v300_v1  ;;  %788 = vmatpush3.msra.mxu1 %v394_v5  ;;  %v295_v9 = vld [vmem:[#allocation5 + $0x50] sm:$0xff]  ;;  %v391_v10 = vld [vmem:[#allocation7 + $0x60] sm:$0xff]  ;;  %v294_v11 = vld [vmem:[#allocation5 + $0x48] sm:$0xff]  ;;  %p1433_p6 = scmp.ne.s32.totalorder %s1425_s7, 0  ;;  %s1126_s22 = smov [#allocation10]  }
  0x68   : > { %754 = vmatprep.subr.mxu0 %v1124_v0  ;;  %789 = vmatprep.subr.mxu1 %v1124_v0  ;;  %v390_v12 = vld [vmem:[#allocation7 + $0x58] sm:$0xff]  ;;  %v293_v13 = vld [vmem:[#allocation5 + $0x40] sm:$0xff]  ;;  %v389_v14 = vld [vmem:[#allocation7 + $0x50] sm:$0xff]  ;;  %s1048_s24 = sshll.u32 %s1126_s22, 4  ;;  %s1049_s24 = int_to_ptr.vmem [resolvable:$false] %s1048_s24 }
  0x69   : > { %755 = vmatpush3.msra.mxu0 %v299_v2  ;;  %790 = vmatpush3.msra.mxu1 %v393_v7  ;;  %v292_v15 = vld [vmem:[#allocation5 + $0x38] sm:$0xff]  ;;  %v388_v16 = vld [vmem:[#allocation7 + $0x48] sm:$0xff]  ;;  %v291_v17 = vld [vmem:[#allocation5 + $0x30] sm:$0xff]  ;;  %s1050_s27 = scalar_lea.vmem %s1049_s24, 256  ;;  %p1051_p5 = scmp.lt.s32.totalorder %s582_s10, %s1049_s24 }
  0x6a   : > { %756 = vmatprep.subr.mxu0 %v1124_v0  ;;  %791 = vmatprep.subr.mxu1 %v1124_v0  ;;  %v387_v18 = vld [vmem:[#allocation7 + $0x40] sm:$0xff]  ;;  %v290_v19 = vld [vmem:[#allocation5 + $0x28] sm:$0xff]  ;;  %v386_v20 = vld [vmem:[#allocation7 + $0x38] sm:$0xff] }
  0x6b   : > { %757 = vmatpush3.msra.mxu0 %v298_v3  ;;  %792 = vmatpush3.msra.mxu1 %v392_v8  ;;  %v289_v21 = vld [vmem:[#allocation5 + $0x20] sm:$0xff]  ;;  %v385_v22 = vld [vmem:[#allocation7 + $0x30] sm:$0xff]  ;;  %v288_v23 = vld [vmem:[#allocation5 + $0x18] sm:$0xff] }
  0x6c   : > { %758 = vmatprep.subr.mxu0 %v1124_v0  ;;  %793 = vmatprep.subr.mxu1 %v1124_v0  ;;  %v384_v24 = vld [vmem:[#allocation7 + $0x28] sm:$0xff]  ;;  %v287_v25 = vld [vmem:[#allocation5 + $0x10] sm:$0xff]  ;;  %v383_v26 = vld [vmem:[#allocation7 + $0x20] sm:$0xff] }
  0x6d   : > { %759 = vmatpush3.msra.mxu0 %v297_v4  ;;  %794 = vmatpush3.msra.mxu1 %v391_v10  ;;  %v286_v27 = vld [vmem:[#allocation5 + $0x8] sm:$0xff]  ;;  %v382_v28 = vld [vmem:[#allocation7 + $0x18] sm:$0xff]  ;;  %v285_v29 = vld [vmem:[#allocation5] sm:$0xff] }
  0x6e   : > { %760 = vmatprep.subr.mxu0 %v1124_v0  ;;  %795 = vmatprep.subr.mxu1 %v1124_v0  ;;  %v284_v30 = vld [vmem:[%s1289_s29] sm:$0xff]  ;;  %v380_v32 = vld [vmem:[#allocation7 + $0x8] sm:$0xff]  ;;  %v379_v33 = vld [vmem:[#allocation7] sm:$0xff]  ;;  %s1044_s29 = scalar_lea.vmem %s582_s10, 128 }
  0x6f   : > { %761 = vmatpush3.msra.mxu0 %v296_v6  ;;  %796 = vmatpush3.msra.mxu1 %v390_v12  ;;  %v381_v31 = vld [vmem:[#allocation7 + $0x10] sm:$0xff]  ;;  %v488_v34 = vld [vmem:[#allocation8 + $0x78] sm:$0xff]  ;;  %v486_v36 = vld [vmem:[#allocation8 + $0x68] sm:$0xff]  ;;  %p1045_p4 = scmp.ne.s32.totalorder %s582_s10, %s1044_s29  ;;  %p1052_p3 = scmp.lt.s32.totalorder %s1050_s27, %s1044_s29 }
  0x70   : > { %762 = vmatprep.subr.mxu0 %v1124_v0  ;;  %797 = vmatprep.subr.mxu1 %v1124_v0  ;;  %v487_v35 = vld [vmem:[#allocation8 + $0x70] sm:$0xff]  ;;  %v485_v37 = vld [vmem:[#allocation8 + $0x60] sm:$0xff]  ;;  %v484_v38 = vld [vmem:[#allocation8 + $0x58] sm:$0xff] }
  0x71   : > { %763 = vmatpush3.msra.mxu0 %v295_v9  ;;  %798 = vmatpush3.msra.mxu1 %v389_v14  ;;  %v483_v39 = vld [vmem:[#allocation8 + $0x50] sm:$0xff]  ;;  %v482_v40 = vld [vmem:[#allocation8 + $0x48] sm:$0xff]  ;;  %v481_v41 = vld [vmem:[#allocation8 + $0x40] sm:$0xff]  ;;  %p1046_p12 = pnand %p1045_p4, %p1433_p6  ;;  %p1053_p7 = por %p1052_p3, %p1051_p5 }
  0x72   : > { %764 = vmatprep.subr.mxu0 %v1124_v0  ;;  %799 = vmatprep.subr.mxu1 %v1124_v0  ;;  %v480_v42 = vld [vmem:[#allocation8 + $0x38] sm:$0xff]  ;;  %v479_v43 = vld [vmem:[#allocation8 + $0x30] sm:$0xff]  ;;  %v478_v44 = vld [vmem:[#allocation8 + $0x28] sm:$0xff] }
  0x73   : > { %765 = vmatpush3.msra.mxu0 %v294_v11  ;;  %800 = vmatpush3.msra.mxu1 %v388_v16  ;;  %v477_v45 = vld [vmem:[#allocation8 + $0x20] sm:$0xff]  ;;  %v476_v46 = vld [vmem:[#allocation8 + $0x18] sm:$0xff]  ;;  %v694_v47 = vld [vmem:[%s1414_s4] ss:$0 sm:$0xff]  ;;  %p1047_p0 = pneg %p1046_p12 }
  0x74   : > { %766 = vmatprep.subr.mxu0 %v1124_v0  ;;  %801 = vmatprep.subr.mxu1 %v1124_v0  ;;  %v475_v52 = vld [vmem:[#allocation8 + $0x10] sm:$0xff]  ;;  %v474_v53 = vld [vmem:[#allocation8 + $0x8] sm:$0xff]  ;;  %v473_v54 = vld [vmem:[#allocation8] sm:$0xff] }
  0x75   : > { %767 = vmatpush3.msra.mxu0 %v293_v13  ;;  %802 = vmatpush3.msra.mxu1 %v387_v18  ;;  %v695_v55 = vld [vmem:[%s1414_s4 + $0x1] ss:$0 sm:$0xff]  ;;  %v696_v60 = vld [vmem:[%s1414_s4 + $0x2] ss:$0 sm:$0xff]  ;;  %p1054_p9 = pnand %p1053_p7, %p1047_p0 }
  0x76   : > { %768 = vmatprep.subr.mxu0 %v1124_v0  ;;  %803 = vmatprep.subr.mxu1 %v1124_v0 }
  0x77   : > { %769 = vmatpush3.msra.mxu0 %v292_v15  ;;  %804 = vmatpush3.msra.mxu1 %v386_v20 }
  0x78   : > { %770 = vmatprep.subr.mxu0 %v1124_v0  ;;  %805 = vmatprep.subr.mxu1 %v1124_v0 }
  0x79   : > { %771 = vmatpush3.msra.mxu0 %v291_v17  ;;  %806 = vmatpush3.msra.mxu1 %v385_v22 }
  0x7a   : > { %772 = vmatprep.subr.mxu0 %v1124_v0  ;;  %807 = vmatprep.subr.mxu1 %v1124_v0 }
  0x7b   : > { %773 = vmatpush3.msra.mxu0 %v290_v19  ;;  %808 = vmatpush3.msra.mxu1 %v384_v24 }
  0x7c   : > { %774 = vmatprep.subr.mxu0 %v1124_v0  ;;  %809 = vmatprep.subr.mxu1 %v1124_v0 }
  0x7d   : > { %775 = vmatpush3.msra.mxu0 %v289_v21  ;;  %810 = vmatpush3.msra.mxu1 %v383_v26 }
  0x7e   : > { %776 = vmatprep.subr.mxu0 %v1124_v0  ;;  %811 = vmatprep.subr.mxu1 %v1124_v0 }
  0x7f   : > { %777 = vmatpush3.msra.mxu0 %v288_v23  ;;  %812 = vmatpush3.msra.mxu1 %v382_v28 }
  0x80   : > { %778 = vmatprep.subr.mxu0 %v1124_v0  ;;  %813 = vmatprep.subr.mxu1 %v1124_v0 }
  0x81   : > { %779 = vmatpush3.msra.mxu0 %v287_v25  ;;  %814 = vmatpush3.msra.mxu1 %v381_v31 }
  0x82   : > { %780 = vmatprep.subr.mxu0 %v1124_v0  ;;  %815 = vmatprep.subr.mxu1 %v1124_v0 }
  0x83   : > { %781 = vmatpush3.msra.mxu0 %v286_v27  ;;  %816 = vmatpush3.msra.mxu1 %v380_v32 }
  0x84   : > { %782 = vmatprep.subr.mxu0 %v1124_v0  ;;  %817 = vmatprep.subr.mxu1 %v1124_v0 }
  0x85   : > { %783 = vmatpush3.msra.mxu0 %v285_v29  ;;  %818 = vmatpush3.msra.mxu1 %v379_v33 }
  0x86   : > { %785 = vmatmul.mubr.f32.vlgmr.msra.gmra.mxu0 %v284_v30  ;;  %822 = vmatprep.subr.mxu0 %v1124_v0 }
  0x87   : > { %854 = vmatprep.mubr.msk.f32.mxu0 %vm1125_vm0, %v1124_v0  ;;  %823 = vmatpush3.msra.mxu0 %v488_v34 }
  0x88   : > { %824 = vmatprep.subr.mxu0 %v1124_v0 }
  0x89   : > { %825 = vmatpush3.msra.mxu0 %v487_v35 }
  0x8a   : > { %826 = vmatprep.subr.mxu0 %v1124_v0 }
  0x8b   : > { %827 = vmatpush3.msra.mxu0 %v486_v36 }
  0x8c   : > { %828 = vmatprep.subr.mxu0 %v1124_v0 }
  0x8d   : > { %829 = vmatpush3.msra.mxu0 %v485_v37 }
  0x8e   : > { %830 = vmatprep.subr.mxu0 %v1124_v0 }
  0x8f   : > { %831 = vmatpush3.msra.mxu0 %v484_v38 }
  0x90   : > { %832 = vmatprep.subr.mxu0 %v1124_v0 }
  0x91   : > { %833 = vmatpush3.msra.mxu0 %v483_v39 }
  0x92   : > { %834 = vmatprep.subr.mxu0 %v1124_v0 }
  0x93   : > { %835 = vmatpush3.msra.mxu0 %v482_v40 }
  0x94   : > { %836 = vmatprep.subr.mxu0 %v1124_v0 }
  0x95   : > { %837 = vmatpush3.msra.mxu0 %v481_v41 }
  0x96   : > { %838 = vmatprep.subr.mxu0 %v1124_v0 }
  0x97   : > { %839 = vmatpush3.msra.mxu0 %v480_v42 }
  0x98   : > { %840 = vmatprep.subr.mxu0 %v1124_v0 }
  0x99   : > { %841 = vmatpush3.msra.mxu0 %v479_v43 }
  0x9a   : > { %842 = vmatprep.subr.mxu0 %v1124_v0 }
  0x9b   : > { %843 = vmatpush3.msra.mxu0 %v478_v44 }
  0x9c   : > { %844 = vmatprep.subr.mxu0 %v1124_v0 }
  0x9d   : > { %845 = vmatpush3.msra.mxu0 %v477_v45 }
  0x9e   : > { %846 = vmatprep.subr.mxu0 %v1124_v0 }
  0x9f   : > { %847 = vmatpush3.msra.mxu0 %v476_v46 }
  0xa0   : > { %848 = vmatprep.subr.mxu0 %v1124_v0 }
  0xa1   : > { %849 = vmatpush3.msra.mxu0 %v475_v52 }
  0xa2   : > { %850 = vmatprep.subr.mxu0 %v1124_v0 }
  0xa3   : > { %851 = vmatpush3.msra.mxu0 %v474_v53 }
  0xa4   : > { %852 = vmatprep.subr.mxu0 %v1124_v0 }
  0xa5   : > { %853 = vmatpush3.msra.mxu0 %v473_v54 }
 0x146   : > { %v374_v48 = vpop.f32.mrf.mxu0 }
 0x147   : > { %v375_v49 = vadd.f32 %v694_v47, %v374_v48 }
 0x148   : > { %v786_v50 = vpop.f32.mrf.mxu0 }
 0x149   : > { %v378_v51 = vmax.f32 %v375_v49, 0.0 }
 0x14b   : > { %820 = vmatmul.mubr.f32.vlgmr.msra.gmra.mxu1 %v378_v51 }
 0x20b   : > { %v468_v56 = vpop.f32.mrf.mxu1 }
 0x20c   : > { %v469_v57 = vadd.f32 %v695_v55, %v468_v56 }
 0x20d   : > { %v821_v58 = vpop.f32.mrf.mxu1 }
 0x20e   : > { %v472_v59 = vmax.f32 %v469_v57, 0.0 }
 0x210   : > { %855 = vmatmul.mubr.f32.vlgmr.msra.gmra.mxu0 %v472_v59 }
 0x2d0   : > { %v562_v61 = vpop.f32.mrf.mxu0 }
 0x2d1   : > { %v563_v62 = vadd.f32 %v696_v60, %v562_v61 }
 0x2d2   : > { %v856_v63 = vpop.f32.mrf.mxu0 }
 0x2d3   : > { %566 = vst [vmem:[%s283_s8] sm:$0xff] %v563_v62 }
 0x2d4   : > { %1057 = shalt.err (!%p1054_p9)
}
 0x2d5   : > { %s1058_s26 = scalar_lea.hbm %s1373_s14, 128  ;;  %s1062_s15 = scalar_lea.hbm %s1415_s5, 256 }
 0x2d6   : > { %p1059_p13 = scmp.ne.s32.totalorder %s1373_s14, %s1058_s26  ;;  %p1063_p11 = scmp.lt.s32.totalorder %s1373_s14, %s1415_s5 }
 0x2d7   : > { %p1064_p1 = scmp.lt.s32.totalorder %s1062_s15, %s1058_s26 }
 0x2d8   : > { %p1060_p8 = pnand %p1059_p13, %p1433_p6 }
 0x2d9   : > { %p1065_p2 = por %p1064_p1, %p1063_p11 }
 0x2da   : > { %p1061_p10 = pneg %p1060_p8 }
 0x2dc   : > { %p1066_p4 = pnand %p1065_p2, %p1061_p10 }
 0x2de   : > { %1069 = shalt.err (!%p1066_p4)
}
 0x2df   : > { %871 = dma.vmem_to_hbm [thread:$0]  (%p1433_p6), %s582_s10, 128, %s1373_s14, %s568_s30  }
 0x2e0 PF: > { %s593_s12 = sand.u32 1, %s1104_s18   ;;  %p1434_p12 = scmp.ne.s32.totalorder %s1421_s25, 0 }
 0x2e1   : > { %p1435_p0 = scmp.ge.s32.totalorder %s1116_s21, 2  ;;  %s594_s8 = scalar_lea.sflag [#allocation4], %s593_s12 }
 0x2e3   : > { %p888_p5 = pnand %p1435_p0, %p1434_p12 }
 0x2e5   : > { %p889_p3 = pneg %p888_p5 }
 0x2e7   : > { %1099 = dma.done.wait (%p889_p3), %s594_s8, 128  }
 0x2e8   : > { %1101 = vsyncadd (%p889_p3), %s594_s8, 4294967168  ;;  %p20_p7 = scmp.ge.s32.totalorder %s1237_s28, 4   ;;  %s1436_s18 = smov %s1108_s19 }
 0x2e9   : > { %s1437_s19 = smov %s1112_s20  ;;  %s1438_s20 = smov %s1247_s6 }
 0x2ea   : > { %s1439_s21 = smov %s1237_s28  ;;  %22 = sbr.rel (!%p20_p7) target bundleno = 7 (0x7), region = 97 }
 0x2ef   :  { %599 = vsyncpa [#allocation3], 1 }
 0x2f0   :  { %601 = vsyncpa [#allocation3 + $0x1], 1 }
 0x2f1   :  { %602 = vsyncpa [#allocation6], 1 }
 0x2f2   :  { %603 = vsyncpa [#allocation9], 1 }
 0x2f3   :  { %604 = vsyncpa [#allocation4], 1 }
 0x2f4   :  { %606 = vsyncpa [#allocation4 + $0x1], 1 }

// kernel: tpu_custom_call.1
= control target key start
LH: loop header
LB: loop body
LE: loop exit
PB: predicated region body
PF: predicated region fallthrough
CT: control target
= control target key end

     0   :  { %10 = vsyncpa [#allocation3], 0  ;;  %s1410_s0 = inlined_call_operand.hbm [shape: f32[16,128], index: 0, kind: input, shape index: {}]   ;;  %s1411_s1 = inlined_call_operand.hbm [shape: f32[128,128], index: 1, kind: input, shape index: {}]   ;;  %s1412_s2 = inlined_call_operand.hbm [shape: f32[128,128], index: 2, kind: input, shape index: {}]   ;;  %s1413_s3 = inlined_call_operand.hbm [shape: f32[128,128], index: 3, kind: input, shape index: {}]   ;;  %s1414_s4 = inlined_call_operand.vmem [shape: f32[1,384], index: 4, kind: input, shape index: {}]   ;;  %s1415_s5 = inlined_call_operand.hbm [shape: f32[16,128], index: 5, kind: output, shape index: {}]  }
   0x1   :  { %12 = vsyncpa [#allocation3 + $0x1], 0 }
   0x2   :  { %13 = vsyncpa [#allocation6], 0 }
   0x3   :  { %14 = vsyncpa [#allocation9], 0 }
   0x4   :  { %15 = vsyncpa [#allocation4], 0 }
   0x5   :  { %17 = vsyncpa [#allocation4 + $0x1], 0  ;;  %s1157_s18 = smov 0   ;;  %s1159_s19 = smov 0  }
   0x6   :  { %s1161_s20 = smov 0   ;;  %s1163_s21 = smov 0  }
   0x7 LB: > { %s1178_s22 = sadd.s32 4294967295, %s1116_s21   ;;  %s680_s23 = sadd.s32 4294967294, %s1116_s21   ;;  %s1116_s21 = sphi %s1163_s21, %s1439_s21   ;;  %s1112_s20 = sphi %s1161_s20, %s1438_s20   ;;  %s1108_s19 = sphi %s1159_s19, %s1437_s19   ;;  %s1104_s18 = sphi %s1157_s18, %s1436_s18  }
   0x8   : > { %p43_p0 = scmp.ne.s32.totalorder %s1108_s19, %s1104_s18  ;;  %p1416_p1 = scmp.eq.s32.totalorder %s1178_s22, 0 }
   0x9   : > { %p157_p3 = scmp.eq.s32.totalorder %s680_s23, 1  ;;  %p681_p5 = scmp.ge.s32.totalorder %s1116_s21, 1 }
   0xa   : > { %p1187_p4 = por %p1416_p1, %p43_p0  ;;  %p164_p7 = scmp.lt.s32.totalorder %s1116_s21, 3 }
   0xb   : > { %p1192_p6 = por %p157_p3, %p43_p0  ;;  %s1118_s27 = smov [#allocation5]  }
   0xc   : > { %s1420_s24 = scalar_select %p1187_p4, 1, 0 }
   0xd   : > { %s1421_s25 = scalar_select %p1192_p6, 1, 0 }
   0xe   : > { %p1197_p8 = pnand %p681_p5, %p164_p7  ;;  %s176_s28 = sshll.u32 %s1118_s27, 4  ;;  %s177_s28 = int_to_ptr.vmem [resolvable:$true] %s176_s28 }
   0xf   : > { %s1119_s30 = smov [#allocation7]   ;;  %s1120_s7 = smov [#allocation8]  }
  0x10   : > { %s1422_s26 = scalar_select %p1197_p8, 1, 0 }
  0x11   : > { %p873_p9 = pneg %p1197_p8  ;;  %s189_s6 = sshll.u32 %s1119_s30, 4  ;;  %s190_s6 = int_to_ptr.vmem [resolvable:$true] %s189_s6 }
  0x12   : > { %s202_s8 = sshll.u32 %s1120_s7, 4  ;;  %s949_s9 = scalar_lea.vmem %s177_s28, 2048  ;;  %s203_s8 = int_to_ptr.vmem [resolvable:$true] %s202_s8 }
  0x13   : > { %p1206_p11 = pnand %p873_p9, %p1416_p1  ;;  %p950_p13 = scmp.ne.s32.totalorder %s177_s28, %s949_s9 }
  0x14   : > { %p957_p5 = scmp.lt.s32.totalorder %s177_s28, %s177_s28  ;;  %p958_p7 = scmp.lt.s32.totalorder %s949_s9, %s949_s9 }
  0x15   : > { %p940_p12 = pneg %p1206_p11 }
  0x16   : > { %p959_p9 = por %p958_p7, %p957_p5 }
  0x17   : > { %p952_p0 = pnand %p950_p13, %p940_p12 }
  0x19   : > { %p953_p3 = pneg %p952_p0 }
  0x1b   : > { %p960_p10 = pnand %p959_p9, %p953_p3 }
  0x1d   : > { %963 = shalt.err (!%p960_p10)
}
  0x1e   : > { %s1121_s10 = smov 128   ;;  %s1122_s11 = smov 8  }
  0x1f   : > { %876 = dma.hbm_to_vmem [thread:$0]  (!%p1206_p11), %s1411_s1, 2048, %s177_s28, [#allocation6], %s1121_s10, %s1121_s10, %s1122_s11  }
  0x20   : > { %s975_s14 = scalar_lea.vmem %s190_s6, 2048  ;;  %p983_p2 = scmp.lt.s32.totalorder %s190_s6, %s190_s6 }
  0x21   : > { %p976_p1 = scmp.ne.s32.totalorder %s190_s6, %s975_s14  ;;  %p984_p6 = scmp.lt.s32.totalorder %s975_s14, %s975_s14 }
  0x23   : > { %p978_p13 = pnand %p976_p1, %p940_p12  ;;  %p985_p5 = por %p984_p6, %p983_p2 }
  0x25   : > { %p979_p0 = pneg %p978_p13 }
  0x27   : > { %p986_p3 = pnand %p985_p5, %p979_p0 }
  0x29   : > { %989 = shalt.err (!%p986_p3)
}
  0x2a   : > { %879 = dma.hbm_to_vmem [thread:$0]  (!%p1206_p11), %s1412_s2, 2048, %s190_s6, [#allocation6], %s1121_s10, %s1121_s10, %s1122_s11  }
  0x2b   : > { %s1001_s17 = scalar_lea.vmem %s203_s8, 2048  ;;  %p1009_p9 = scmp.lt.s32.totalorder %s203_s8, %s203_s8 }
  0x2c   : > { %p1002_p10 = scmp.ne.s32.totalorder %s203_s8, %s1001_s17  ;;  %p1010_p13 = scmp.lt.s32.totalorder %s1001_s17, %s1001_s17 }
  0x2e   : > { %p1004_p7 = pnand %p1002_p10, %p940_p12  ;;  %p1011_p4 = por %p1010_p13, %p1009_p9 }
  0x30   : > { %p1005_p1 = pneg %p1004_p7 }
  0x32   : > { %p1012_p2 = pnand %p1011_p4, %p1005_p1 }
  0x34   : > { %1015 = shalt.err (!%p1012_p2)
}
  0x35   : > { %882 = dma.hbm_to_vmem [thread:$0]  (!%p1206_p11), %s1413_s3, 2048, %s203_s8, [#allocation9], %s1121_s10, %s1121_s10, %s1122_s11  }
  0x36   : > { %s1237_s28 = sadd.s32 1, %s1116_s21   ;;  %s30_s29 = sadd.s32 1, %s1112_s20 }
  0x37   : > { %s27_s30 = ssub.s32 %s1116_s21, %s1237_s28  ;;  %p37_p6 = scmp.ne.s32.totalorder %s1112_s20, %s1108_s19 }
  0x38   : > { %p28_p4 = scmp.eq.s32.totalorder %s27_s30, 0  ;;  %p38_p12 = scmp.eq.s32.totalorder %s1116_s21, 0 }
  0x39   : > { %p894_p0 = scmp.lt.s32.totalorder %s1116_s21, 2  ;;  %p1424_p3 = scmp.eq.s32.totalorder %s1178_s22, 1 }
  0x3a   : > { %s1247_s6 = scalar_select %p28_p4, %s1112_s20, %s30_s29  }
  0x3b   : > { %p39_p5 = por %p38_p12, %p37_p6  ;;  %p1251_p10 = por %p1424_p3, %p37_p6 }
  0x3c   : > { %s219_s9 = sand.u32 1, %s1112_s20   ;;  %s687_s12 = sshll.u32 %s1116_s21, 7 }
  0x3d   : > { %s1425_s7 = scalar_select %p1251_p10, 1, 0 }
  0x3e   : > { %s686_s8 = sshll.u32 %s219_s9, 3  ;;  %s1260_s13 = scalar_lea.hbm %s1410_s0, %s687_s12 }
  0x3f   : > { %s223_s14 = scalar_lea.vmem [#allocation2], %s686_s8  ;;  %p1262_p11 = pnand %p894_p0, %p39_p5 }
  0x40   : > { %s230_s15 = sshll.u32 %s223_s14, 4  ;;  %s220_s17 = scalar_lea.sflag [#allocation3], %s219_s9  ;;  %s231_s15 = int_to_ptr.vmem [resolvable:$true] %s230_s15 }
  0x41   : > { %s1016_s23 = scalar_lea.hbm %s1260_s13, 128  ;;  %p1018_p1 = pneg %p1262_p11 }
  0x42   : > { %p1017_p7 = scmp.ne.s32.totalorder %s1260_s13, %s1016_s23  ;;  %s1021_s29 = scalar_lea.hbm %s1410_s0, 256 }
  0x43   : > { %p1022_p2 = scmp.lt.s32.totalorder %s1260_s13, %s1410_s0  ;;  %p1023_p4 = scmp.lt.s32.totalorder %s1021_s29, %s1016_s23 }
  0x44   : > { %p1019_p9 = pnand %p1018_p1, %p1017_p7 }
  0x45   : > { %p1024_p6 = por %p1023_p4, %p1022_p2 }
  0x46   : > { %p1020_p13 = pneg %p1019_p9 }
  0x48   : > { %p1025_p12 = pnand %p1024_p6, %p1020_p13 }
  0x4a   : > { %1028 = shalt.err (!%p1025_p12)
}
  0x4b   : > { %s1029_s10 = scalar_lea.vmem %s231_s15, 128  ;;  %s1123_s9 = smov [#allocation2]  }
  0x4c   : > { %p1030_p0 = scmp.ne.s32.totalorder %s231_s15, %s1029_s10  ;;  %s1034_s11 = sshll.u32 %s1123_s9, 4  ;;  %s1035_s11 = int_to_ptr.vmem [resolvable:$false] %s1034_s11 }
  0x4d   : > { %s1036_s14 = scalar_lea.vmem %s1035_s11, 256  ;;  %p1037_p7 = scmp.lt.s32.totalorder %s231_s15, %s1035_s11 }
  0x4e   : > { %p1032_p5 = pnand %p1030_p0, %p1018_p1  ;;  %p1038_p9 = scmp.lt.s32.totalorder %s1036_s14, %s1029_s10 }
  0x50   : > { %p1033_p3 = pneg %p1032_p5  ;;  %p1039_p10 = por %p1038_p9, %p1037_p7 }
  0x52   : > { %p1040_p8 = pnand %p1039_p10, %p1033_p3 }
  0x54   : > { %1043 = shalt.err (!%p1040_p8)
}
  0x55   : > { %886 = dma.hbm_to_vmem [thread:$0]  (!%p1262_p11), %s1260_s13, 128, %s231_s15, %s220_s17  }
  0x56   : > { %p1427_p13 = scmp.ne.s32.totalorder %s1422_s26, 0 }
  0x57   : > { %s1283_s23 = sand.u32 (!%p1427_p13), 1, %s1108_s19   ;;  %p1428_p8 = scmp.ne.s32.totalorder (!%p1427_p13), %s1420_s24, 0 }
  0x58   : > { %239 = sbr.rel (%p1427_p13) target bundleno = 736 (0x2e0), region = 40  ;;  %s689_s27 = sshll.u32 (!%p1427_p13), %s1283_s23, 3 }
  0x59   : > { %s242_s30 = scalar_lea.sflag (!%p1427_p13), [#allocation3], %s1283_s23  ;;  %s1289_s29 = scalar_lea.vmem (!%p1427_p13), [#allocation2], %s689_s27 }
  0x5d   : > { %1087 = dma.done.wait (%p1428_p8), %s242_s30, 128  }
  0x5e   : > { %1089 = vsyncadd (%p1428_p8), %s242_s30, 4294967168  ;;  %p1429_p10 = scmp.eq.s32.totalorder %s1178_s22, 0 }
  0x60   : > { %1091 = dma.done.wait (%p1429_p10), [#allocation6], 4096   ;;  %p1430_p11 = pmov %p1429_p10 }
  0x61   : > { %p1431_p1 = pmov %p1429_p10 }
  0x62   : > { %1093 = vsyncadd (%p1430_p11), [#allocation6], 4294963200 }
  0x63   : > { %1095 = dma.done.wait (%p1431_p1), [#allocation9], 2048   ;;  %p1432_p2 = pmov %p1431_p1 }
  0x64   : > { %v1124_v0 = vmov 0.0   ;;  %vm1125_vm0 = vmmov 0   ;;  %v300_v1 = vld [vmem:[#allocation5 + $0x78] sm:$0xff]  ;;  %v299_v2 = vld [vmem:[#allocation5 + $0x70] sm:$0xff]  ;;  %v298_v3 = vld [vmem:[#allocation5 + $0x68] sm:$0xff]  ;;  %s698_s12 = sshll.u32 %s1178_s22, 7 }
  0x65   : > { %1097 = vsyncadd (%p1432_p2), [#allocation9], 4294965248  ;;  %752 = vmatprep.subr.mxu0 %v1124_v0  ;;  %784 = vmatprep.mubr.msk.f32.mxu0 %vm1125_vm0, %v1124_v0  ;;  %v297_v4 = vld [vmem:[#allocation5 + $0x60] sm:$0xff]  ;;  %v394_v5 = vld [vmem:[#allocation7 + $0x78] sm:$0xff]  ;;  %s283_s8 = scalar_lea.vmem [#allocation10], %s689_s27  ;;  %s1373_s14 = scalar_lea.hbm %s1415_s5, %s698_s12 }
  0x66   : > { %787 = vmatprep.subr.mxu1 %v1124_v0  ;;  %819 = vmatprep.mubr.msk.f32.mxu1 %vm1125_vm0, %v1124_v0  ;;  %v296_v6 = vld [vmem:[#allocation5 + $0x58] sm:$0xff]  ;;  %v393_v7 = vld [vmem:[#allocation7 + $0x70] sm:$0xff]  ;;  %v392_v8 = vld [vmem:[#allocation7 + $0x68] sm:$0xff]  ;;  %s581_s10 = sshll.u32 %s283_s8, 4  ;;  %s568_s30 = scalar_lea.sflag [#allocation4], %s1283_s23  ;;  %s582_s10 = int_to_ptr.vmem [resolvable:$true] %s581_s10 }
  0x67   : > { %753 = vmatpush3.msra.mxu0 %v300_v1  ;;  %788 = vmatpush3.msra.mxu1 %v394_v5  ;;  %v295_v9 = vld [vmem:[#allocation5 + $0x50] sm:$0xff]  ;;  %v391_v10 = vld [vmem:[#allocation7 + $0x60] sm:$0xff]  ;;  %v294_v11 = vld [vmem:[#allocation5 + $0x48] sm:$0xff]  ;;  %p1433_p6 = scmp.ne.s32.totalorder %s1425_s7, 0  ;;  %s1126_s22 = smov [#allocation10]  }
  0x68   : > { %754 = vmatprep.subr.mxu0 %v1124_v0  ;;  %789 = vmatprep.subr.mxu1 %v1124_v0  ;;  %v390_v12 = vld [vmem:[#allocation7 + $0x58] sm:$0xff]  ;;  %v293_v13 = vld [vmem:[#allocation5 + $0x40] sm:$0xff]  ;;  %v389_v14 = vld [vmem:[#allocation7 + $0x50] sm:$0xff]  ;;  %s1048_s24 = sshll.u32 %s1126_s22, 4  ;;  %s1049_s24 = int_to_ptr.vmem [resolvable:$false] %s1048_s24 }
  0x69   : > { %755 = vmatpush3.msra.mxu0 %v299_v2  ;;  %790 = vmatpush3.msra.mxu1 %v393_v7  ;;  %v292_v15 = vld [vmem:[#allocation5 + $0x38] sm:$0xff]  ;;  %v388_v16 = vld [vmem:[#allocation7 + $0x48] sm:$0xff]  ;;  %v291_v17 = vld [vmem:[#allocation5 + $0x30] sm:$0xff]  ;;  %s1050_s27 = scalar_lea.vmem %s1049_s24, 256  ;;  %p1051_p5 = scmp.lt.s32.totalorder %s582_s10, %s1049_s24 }
  0x6a   : > { %756 = vmatprep.subr.mxu0 %v1124_v0  ;;  %791 = vmatprep.subr.mxu1 %v1124_v0  ;;  %v387_v18 = vld [vmem:[#allocation7 + $0x40] sm:$0xff]  ;;  %v290_v19 = vld [vmem:[#allocation5 + $0x28] sm:$0xff]  ;;  %v386_v20 = vld [vmem:[#allocation7 + $0x38] sm:$0xff] }
  0x6b   : > { %757 = vmatpush3.msra.mxu0 %v298_v3  ;;  %792 = vmatpush3.msra.mxu1 %v392_v8  ;;  %v289_v21 = vld [vmem:[#allocation5 + $0x20] sm:$0xff]  ;;  %v385_v22 = vld [vmem:[#allocation7 + $0x30] sm:$0xff]  ;;  %v288_v23 = vld [vmem:[#allocation5 + $0x18] sm:$0xff] }
  0x6c   : > { %758 = vmatprep.subr.mxu0 %v1124_v0  ;;  %793 = vmatprep.subr.mxu1 %v1124_v0  ;;  %v384_v24 = vld [vmem:[#allocation7 + $0x28] sm:$0xff]  ;;  %v287_v25 = vld [vmem:[#allocation5 + $0x10] sm:$0xff]  ;;  %v383_v26 = vld [vmem:[#allocation7 + $0x20] sm:$0xff] }
  0x6d   : > { %759 = vmatpush3.msra.mxu0 %v297_v4  ;;  %794 = vmatpush3.msra.mxu1 %v391_v10  ;;  %v286_v27 = vld [vmem:[#allocation5 + $0x8] sm:$0xff]  ;;  %v382_v28 = vld [vmem:[#allocation7 + $0x18] sm:$0xff]  ;;  %v285_v29 = vld [vmem:[#allocation5] sm:$0xff] }
  0x6e   : > { %760 = vmatprep.subr.mxu0 %v1124_v0  ;;  %795 = vmatprep.subr.mxu1 %v1124_v0  ;;  %v284_v30 = vld [vmem:[%s1289_s29] sm:$0xff]  ;;  %v380_v32 = vld [vmem:[#allocation7 + $0x8] sm:$0xff]  ;;  %v379_v33 = vld [vmem:[#allocation7] sm:$0xff]  ;;  %s1044_s29 = scalar_lea.vmem %s582_s10, 128 }
  0x6f   : > { %761 = vmatpush3.msra.mxu0 %v296_v6  ;;  %796 = vmatpush3.msra.mxu1 %v390_v12  ;;  %v381_v31 = vld [vmem:[#allocation7 + $0x10] sm:$0xff]  ;;  %v488_v34 = vld [vmem:[#allocation8 + $0x78] sm:$0xff]  ;;  %v486_v36 = vld [vmem:[#allocation8 + $0x68] sm:$0xff]  ;;  %p1045_p4 = scmp.ne.s32.totalorder %s582_s10, %s1044_s29  ;;  %p1052_p3 = scmp.lt.s32.totalorder %s1050_s27, %s1044_s29 }
  0x70   : > { %762 = vmatprep.subr.mxu0 %v1124_v0  ;;  %797 = vmatprep.subr.mxu1 %v1124_v0  ;;  %v487_v35 = vld [vmem:[#allocation8 + $0x70] sm:$0xff]  ;;  %v485_v37 = vld [vmem:[#allocation8 + $0x60] sm:$0xff]  ;;  %v484_v38 = vld [vmem:[#allocation8 + $0x58] sm:$0xff] }
  0x71   : > { %763 = vmatpush3.msra.mxu0 %v295_v9  ;;  %798 = vmatpush3.msra.mxu1 %v389_v14  ;;  %v483_v39 = vld [vmem:[#allocation8 + $0x50] sm:$0xff]  ;;  %v482_v40 = vld [vmem:[#allocation8 + $0x48] sm:$0xff]  ;;  %v481_v41 = vld [vmem:[#allocation8 + $0x40] sm:$0xff]  ;;  %p1046_p12 = pnand %p1045_p4, %p1433_p6  ;;  %p1053_p7 = por %p1052_p3, %p1051_p5 }
  0x72   : > { %764 = vmatprep.subr.mxu0 %v1124_v0  ;;  %799 = vmatprep.subr.mxu1 %v1124_v0  ;;  %v480_v42 = vld [vmem:[#allocation8 + $0x38] sm:$0xff]  ;;  %v479_v43 = vld [vmem:[#allocation8 + $0x30] sm:$0xff]  ;;  %v478_v44 = vld [vmem:[#allocation8 + $0x28] sm:$0xff] }
  0x73   : > { %765 = vmatpush3.msra.mxu0 %v294_v11  ;;  %800 = vmatpush3.msra.mxu1 %v388_v16  ;;  %v477_v45 = vld [vmem:[#allocation8 + $0x20] sm:$0xff]  ;;  %v476_v46 = vld [vmem:[#allocation8 + $0x18] sm:$0xff]  ;;  %v694_v47 = vld [vmem:[%s1414_s4] ss:$0 sm:$0xff]  ;;  %p1047_p0 = pneg %p1046_p12 }
  0x74   : > { %766 = vmatprep.subr.mxu0 %v1124_v0  ;;  %801 = vmatprep.subr.mxu1 %v1124_v0  ;;  %v475_v52 = vld [vmem:[#allocation8 + $0x10] sm:$0xff]  ;;  %v474_v53 = vld [vmem:[#allocation8 + $0x8] sm:$0xff]  ;;  %v473_v54 = vld [vmem:[#allocation8] sm:$0xff] }
  0x75   : > { %767 = vmatpush3.msra.mxu0 %v293_v13  ;;  %802 = vmatpush3.msra.mxu1 %v387_v18  ;;  %v695_v55 = vld [vmem:[%s1414_s4 + $0x1] ss:$0 sm:$0xff]  ;;  %v696_v60 = vld [vmem:[%s1414_s4 + $0x2] ss:$0 sm:$0xff]  ;;  %p1054_p9 = pnand %p1053_p7, %p1047_p0 }
  0x76   : > { %768 = vmatprep.subr.mxu0 %v1124_v0  ;;  %803 = vmatprep.subr.mxu1 %v1124_v0 }
  0x77   : > { %769 = vmatpush3.msra.mxu0 %v292_v15  ;;  %804 = vmatpush3.msra.mxu1 %v386_v20 }
  0x78   : > { %770 = vmatprep.subr.mxu0 %v1124_v0  ;;  %805 = vmatprep.subr.mxu1 %v1124_v0 }
  0x79   : > { %771 = vmatpush3.msra.mxu0 %v291_v17  ;;  %806 = vmatpush3.msra.mxu1 %v385_v22 }
  0x7a   : > { %772 = vmatprep.subr.mxu0 %v1124_v0  ;;  %807 = vmatprep.subr.mxu1 %v1124_v0 }
  0x7b   : > { %773 = vmatpush3.msra.mxu0 %v290_v19  ;;  %808 = vmatpush3.msra.mxu1 %v384_v24 }
  0x7c   : > { %774 = vmatprep.subr.mxu0 %v1124_v0  ;;  %809 = vmatprep.subr.mxu1 %v1124_v0 }
  0x7d   : > { %775 = vmatpush3.msra.mxu0 %v289_v21  ;;  %810 = vmatpush3.msra.mxu1 %v383_v26 }
  0x7e   : > { %776 = vmatprep.subr.mxu0 %v1124_v0  ;;  %811 = vmatprep.subr.mxu1 %v1124_v0 }
  0x7f   : > { %777 = vmatpush3.msra.mxu0 %v288_v23  ;;  %812 = vmatpush3.msra.mxu1 %v382_v28 }
  0x80   : > { %778 = vmatprep.subr.mxu0 %v1124_v0  ;;  %813 = vmatprep.subr.mxu1 %v1124_v0 }
  0x81   : > { %779 = vmatpush3.msra.mxu0 %v287_v25  ;;  %814 = vmatpush3.msra.mxu1 %v381_v31 }
  0x82   : > { %780 = vmatprep.subr.mxu0 %v1124_v0  ;;  %815 = vmatprep.subr.mxu1 %v1124_v0 }
  0x83   : > { %781 = vmatpush3.msra.mxu0 %v286_v27  ;;  %816 = vmatpush3.msra.mxu1 %v380_v32 }
  0x84   : > { %782 = vmatprep.subr.mxu0 %v1124_v0  ;;  %817 = vmatprep.subr.mxu1 %v1124_v0 }
  0x85   : > { %783 = vmatpush3.msra.mxu0 %v285_v29  ;;  %818 = vmatpush3.msra.mxu1 %v379_v33 }
  0x86   : > { %785 = vmatmul.mubr.f32.vlgmr.msra.gmra.mxu0 %v284_v30  ;;  %822 = vmatprep.subr.mxu0 %v1124_v0 }
  0x87   : > { %854 = vmatprep.mubr.msk.f32.mxu0 %vm1125_vm0, %v1124_v0  ;;  %823 = vmatpush3.msra.mxu0 %v488_v34 }
  0x88   : > { %824 = vmatprep.subr.mxu0 %v1124_v0 }
  0x89   : > { %825 = vmatpush3.msra.mxu0 %v487_v35 }
  0x8a   : > { %826 = vmatprep.subr.mxu0 %v1124_v0 }
  0x8b   : > { %827 = vmatpush3.msra.mxu0 %v486_v36 }
  0x8c   : > { %828 = vmatprep.subr.mxu0 %v1124_v0 }
  0x8d   : > { %829 = vmatpush3.msra.mxu0 %v485_v37 }
  0x8e   : > { %830 = vmatprep.subr.mxu0 %v1124_v0 }
  0x8f   : > { %831 = vmatpush3.msra.mxu0 %v484_v38 }
  0x90   : > { %832 = vmatprep.subr.mxu0 %v1124_v0 }
  0x91   : > { %833 = vmatpush3.msra.mxu0 %v483_v39 }
  0x92   : > { %834 = vmatprep.subr.mxu0 %v1124_v0 }
  0x93   : > { %835 = vmatpush3.msra.mxu0 %v482_v40 }
  0x94   : > { %836 = vmatprep.subr.mxu0 %v1124_v0 }
  0x95   : > { %837 = vmatpush3.msra.mxu0 %v481_v41 }
  0x96   : > { %838 = vmatprep.subr.mxu0 %v1124_v0 }
  0x97   : > { %839 = vmatpush3.msra.mxu0 %v480_v42 }
  0x98   : > { %840 = vmatprep.subr.mxu0 %v1124_v0 }
  0x99   : > { %841 = vmatpush3.msra.mxu0 %v479_v43 }
  0x9a   : > { %842 = vmatprep.subr.mxu0 %v1124_v0 }
  0x9b   : > { %843 = vmatpush3.msra.mxu0 %v478_v44 }
  0x9c   : > { %844 = vmatprep.subr.mxu0 %v1124_v0 }
  0x9d   : > { %845 = vmatpush3.msra.mxu0 %v477_v45 }
  0x9e   : > { %846 = vmatprep.subr.mxu0 %v1124_v0 }
  0x9f   : > { %847 = vmatpush3.msra.mxu0 %v476_v46 }
  0xa0   : > { %848 = vmatprep.subr.mxu0 %v1124_v0 }
  0xa1   : > { %849 = vmatpush3.msra.mxu0 %v475_v52 }
  0xa2   : > { %850 = vmatprep.subr.mxu0 %v1124_v0 }
  0xa3   : > { %851 = vmatpush3.msra.mxu0 %v474_v53 }
  0xa4   : > { %852 = vmatprep.subr.mxu0 %v1124_v0 }
  0xa5   : > { %853 = vmatpush3.msra.mxu0 %v473_v54 }
 0x146   : > { %v374_v48 = vpop.f32.mrf.mxu0 }
 0x147   : > { %v375_v49 = vadd.f32 %v694_v47, %v374_v48 }
 0x148   : > { %v786_v50 = vpop.f32.mrf.mxu0 }
 0x149   : > { %v378_v51 = vmax.f32 %v375_v49, 0.0 }
 0x14b   : > { %820 = vmatmul.mubr.f32.vlgmr.msra.gmra.mxu1 %v378_v51 }
 0x20b   : > { %v468_v56 = vpop.f32.mrf.mxu1 }
 0x20c   : > { %v469_v57 = vadd.f32 %v695_v55, %v468_v56 }
 0x20d   : > { %v821_v58 = vpop.f32.mrf.mxu1 }
 0x20e   : > { %v472_v59 = vmax.f32 %v469_v57, 0.0 }
 0x210   : > { %855 = vmatmul.mubr.f32.vlgmr.msra.gmra.mxu0 %v472_v59 }
 0x2d0   : > { %v562_v61 = vpop.f32.mrf.mxu0 }
 0x2d1   : > { %v563_v62 = vadd.f32 %v696_v60, %v562_v61 }
 0x2d2   : > { %v856_v63 = vpop.f32.mrf.mxu0 }
 0x2d3   : > { %566 = vst [vmem:[%s283_s8] sm:$0xff] %v563_v62 }
 0x2d4   : > { %1057 = shalt.err (!%p1054_p9)
}
 0x2d5   : > { %s1058_s26 = scalar_lea.hbm %s1373_s14, 128  ;;  %s1062_s15 = scalar_lea.hbm %s1415_s5, 256 }
 0x2d6   : > { %p1059_p13 = scmp.ne.s32.totalorder %s1373_s14, %s1058_s26  ;;  %p1063_p11 = scmp.lt.s32.totalorder %s1373_s14, %s1415_s5 }
 0x2d7   : > { %p1064_p1 = scmp.lt.s32.totalorder %s1062_s15, %s1058_s26 }
 0x2d8   : > { %p1060_p8 = pnand %p1059_p13, %p1433_p6 }
 0x2d9   : > { %p1065_p2 = por %p1064_p1, %p1063_p11 }
 0x2da   : > { %p1061_p10 = pneg %p1060_p8 }
 0x2dc   : > { %p1066_p4 = pnand %p1065_p2, %p1061_p10 }
 0x2de   : > { %1069 = shalt.err (!%p1066_p4)
}
 0x2df   : > { %871 = dma.vmem_to_hbm [thread:$0]  (%p1433_p6), %s582_s10, 128, %s1373_s14, %s568_s30  }
 0x2e0 PF: > { %s593_s12 = sand.u32 1, %s1104_s18   ;;  %p1434_p12 = scmp.ne.s32.totalorder %s1421_s25, 0 }
 0x2e1   : > { %p1435_p0 = scmp.ge.s32.totalorder %s1116_s21, 2  ;;  %s594_s8 = scalar_lea.sflag [#allocation4], %s593_s12 }
 0x2e3   : > { %p888_p5 = pnand %p1435_p0, %p1434_p12 }
 0x2e5   : > { %p889_p3 = pneg %p888_p5 }
 0x2e7   : > { %1099 = dma.done.wait (%p889_p3), %s594_s8, 128  }
 0x2e8   : > { %1101 = vsyncadd (%p889_p3), %s594_s8, 4294967168  ;;  %p20_p7 = scmp.ge.s32.totalorder %s1237_s28, 4   ;;  %s1436_s18 = smov %s1108_s19 }
 0x2e9   : > { %s1437_s19 = smov %s1112_s20  ;;  %s1438_s20 = smov %s1247_s6 }
 0x2ea   : > { %s1439_s21 = smov %s1237_s28  ;;  %22 = sbr.rel (!%p20_p7) target bundleno = 7 (0x7), region = 97 }
 0x2ef   :  { %599 = vsyncpa [#allocation3], 1 }
 0x2f0   :  { %601 = vsyncpa [#allocation3 + $0x1], 1 }
 0x2f1   :  { %602 = vsyncpa [#allocation6], 1 }
 0x2f2   :  { %603 = vsyncpa [#allocation9], 1 }
 0x2f3   :  { %604 = vsyncpa [#allocation4], 1 }
 0x2f4   :  { %606 = vsyncpa [#allocation4 + $0x1], 1 }

</bundles_post_ra>
